<compile_context>
chip_gen: v5e
topology: v5e:2x2
jax: 0.10.0
libtpu: 0.0.40
codegen_flags: <defaults>
</compile_context>

<pallas_src>
import functools

import jax
import jax.numpy as jnp
from jax.experimental import pallas as pl
from jax.experimental.pallas import tpu as pltpu

IN_FEATURES = 512
NUM_CLASSES = 10
PADDED_CLASSES = 128          # lane-dense class dimension
NEG_BIG = jnp.float32(-1e30)  # bias for padded (fake) classes


def _round_up(n, m):
    return ((n + m - 1) // m) * m


def _mynet_kernel(x_ref, w_ref, b_ref, o_ref):
    # x_ref: (TB, K) bf16   w_ref: (K, Cp) bf16   b_ref: (1, Cp) f32
    # o_ref: (TB, Cp) f32
    logits = jnp.dot(x_ref[...], w_ref[...],
                     preferred_element_type=jnp.float32) + b_ref[...]
    # numerically stable softmax over the class axis (f32 throughout)
    m = jnp.max(logits, axis=1, keepdims=True)
    e = jnp.exp(logits - m)
    denom = jnp.sum(e, axis=1, keepdims=True)
    o_ref[...] = (e * pl.reciprocal(denom)).astype(o_ref.dtype)


@functools.partial(jax.jit, static_argnames=("block_b",))
def mynet_forward(x, w, b, *, block_b=512):
    """x: (B, 512) f32; w: (C, 512) f32 (PyTorch Linear layout); b: (C,) f32."""
    B, K = x.shape
    C = w.shape[0]
    Cp = max(PADDED_CLASSES, _round_up(C, 128))

    # ---- weight packing (would be done once offline for a real model) ----
    w_t = jnp.zeros((K, Cp), jnp.bfloat16).at[:, :C].set(
        jnp.transpose(w).astype(jnp.bfloat16))
    b_p = jnp.full((1, Cp), NEG_BIG, jnp.float32).at[0, :C].set(
        b.astype(jnp.float32))

    # ---- batch tiling: every block the kernel sees is full ----
    TB = min(block_b, _round_up(B, 8))      # multiple of 8 sublanes
    B_pad = _round_up(B, TB)
    x_p = x.astype(jnp.bfloat16)            # halve HBM traffic for the matmul
    if B_pad != B:
        x_p = jnp.pad(x_p, ((0, B_pad - B), (0, 0)))

    out = pl.pallas_call(
        _mynet_kernel,
        out_shape=jax.ShapeDtypeStruct((B_pad, Cp), jnp.float32),
        grid=(B_pad // TB,),
        in_specs=[
            pl.BlockSpec((TB, K), lambda i: (i, 0)),   # batch tile of x
            pl.BlockSpec((K, Cp), lambda i: (0, 0)),   # weights (replicated)
            pl.BlockSpec((1, Cp), lambda i: (0, 0)),   # bias (replicated)
        ],
        out_specs=pl.BlockSpec((TB, Cp), lambda i: (i, 0)),
        compiler_params=pltpu.CompilerParams(
            dimension_semantics=("parallel",),  # independent batch tiles
        ),
    )(x_p, w_t, b_p)

    return out[:B, :C]


# ---------------------------- references ----------------------------------

def _reference_f32(x, w, b):
    logits = x @ w.T + b
    logits = logits - jnp.max(logits, axis=1, keepdims=True)
    e = jnp.exp(logits)
    return e / jnp.sum(e, axis=1, keepdims=True)


def _reference_bf16(x, w, b):
    # Same bf16-input / f32-accumulate matmul the kernel performs.
    logits = jnp.dot(x.astype(jnp.bfloat16), w.T.astype(jnp.bfloat16),
                     preferred_element_type=jnp.float32) + b
    logits = logits - jnp.max(logits, axis=1, keepdims=True)
    e = jnp.exp(logits)
    return e / jnp.sum(e, axis=1, keepdims=True)


if __name__ == "__main__":
    key = jax.random.PRNGKey(0)
    kx, kw, kb, kx2 = jax.random.split(key, 4)

    # Deterministic synthetic parameters (PyTorch Linear layout: (out, in)).
    bound = 1.0 / (IN_FEATURES ** 0.5)
    w = jax.random.uniform(kw, (NUM_CLASSES, IN_FEATURES),
                           minval=-bound, maxval=bound, dtype=jnp.float32)
    b = jax.random.uniform(kb, (NUM_CLASSES,),
                           minval=-bound, maxval=bound, dtype=jnp.float32)

    # --- case 1: tiny batch (single full tile) ---
    B1 = 8
    x1 = jax.random.normal(kx, (B1, IN_FEATURES), dtype=jnp.float32)
    out1 = jax.block_until_ready(mynet_forward(x1, w, b))
    assert out1.shape == (B1, NUM_CLASSES)
    assert jnp.allclose(out1, _reference_bf16(x1, w, b), atol=1e-4, rtol=1e-4)
    assert jnp.allclose(out1, _reference_f32(x1, w, b), atol=5e-2, rtol=5e-2)
    assert jnp.allclose(jnp.sum(out1, axis=1), jnp.ones((B1,)), atol=1e-5)

    # --- case 2: batch not divisible by the tile (exercises grid + padding) ---
    B2 = 300
    x2 = jax.random.normal(kx2, (B2, IN_FEATURES), dtype=jnp.float32)
    out2 = jax.block_until_ready(mynet_forward(x2, w, b, block_b=128))
    assert out2.shape == (B2, NUM_CLASSES)
    assert jnp.allclose(out2, _reference_bf16(x2, w, b), atol=1e-4, rtol=1e-4)
    assert jnp.allclose(out2, _reference_f32(x2, w, b), atol=5e-2, rtol=5e-2)
    assert jnp.allclose(jnp.sum(out2, axis=1), jnp.ones((B2,)), atol=1e-5)

    print("KERNEL_OK")
</pallas_src>

<mosaic_0001>
module attributes {stable_mosaic.version = 11 : i64} {
  func.func @_mynet_kernel(%arg0: i32, %arg1: memref<8x512xbf16, #tpu.memory_space<vmem>>, %arg2: memref<512x128xbf16, #tpu.memory_space<vmem>>, %arg3: memref<1x128xf32, #tpu.memory_space<vmem>>, %arg4: memref<8x128xf32, #tpu.memory_space<vmem>>) attributes {dimension_semantics = [#tpu.dimension_semantics<parallel>], iteration_bounds = array<i64: 1>, scalar_prefetch = 0 : i64, scratch_operands = 0 : i64, tpu.core_type = #tpu.core_type<tc>, window_params = [{transform_indices = @transform_0, window_bounds = array<i64: 8, 512>}, {pipeline_mode = #tpu.pipeline_mode<synchronous>, transform_indices = @transform_1, window_bounds = array<i64: 512, 128>}, {pipeline_mode = #tpu.pipeline_mode<synchronous>, transform_indices = @transform_2, window_bounds = array<i64: 1, 128>}, {transform_indices = @transform_3, window_bounds = array<i64: 8, 128>}]} {
    %c0 = arith.constant 0 : index
    %c0_0 = arith.constant 0 : index
    %0 = vector.load %arg1[%c0, %c0_0] : memref<8x512xbf16, #tpu.memory_space<vmem>>, vector<8x512xbf16>
    %c0_1 = arith.constant 0 : index
    %c0_2 = arith.constant 0 : index
    %1 = vector.load %arg2[%c0_1, %c0_2] : memref<512x128xbf16, #tpu.memory_space<vmem>>, vector<512x128xbf16>
    %cst = arith.constant dense<0.000000e+00> : vector<8x128xf32>
    %2 = tpu.matmul %0, %1, %cst {dimension_numbers = #tpu.dot_dimension_numbers<[1], [0], [0], [1], [0, 0, 1, 1], [], []>} : vector<8x512xbf16>, vector<512x128xbf16>, vector<8x128xf32> -> vector<8x128xf32>
    %c0_3 = arith.constant 0 : index
    %c0_4 = arith.constant 0 : index
    %3 = vector.load %arg3[%c0_3, %c0_4] : memref<1x128xf32, #tpu.memory_space<vmem>>, vector<1x128xf32>
    %4 = vector.broadcast %3 : vector<1x128xf32> to vector<8x128xf32>
    %5 = arith.addf %2, %4 : vector<8x128xf32>
    %cst_5 = arith.constant dense<0xFF800000> : vector<8xf32>
    %6 = vector.multi_reduction <maximumf>, %5, %cst_5 [1] : vector<8x128xf32> to vector<8xf32>
    %7 = vector.shape_cast %6 : vector<8xf32> to vector<8x1xf32>
    %8 = vector.broadcast %7 : vector<8x1xf32> to vector<8x128xf32>
    %9 = arith.subf %5, %8 : vector<8x128xf32>
    %10 = math.exp %9 : vector<8x128xf32>
    %cst_6 = arith.constant dense<0.000000e+00> : vector<8xf32>
    %11 = vector.multi_reduction <add>, %10, %cst_6 [1] : vector<8x128xf32> to vector<8xf32>
    %12 = vector.shape_cast %11 : vector<8xf32> to vector<8x1xf32>
    %13 = tpu.reciprocal %12 : vector<8x1xf32> -> vector<8x1xf32>
    %14 = vector.broadcast %13 : vector<8x1xf32> to vector<8x128xf32>
    %15 = arith.mulf %10, %14 : vector<8x128xf32>
    %c0_7 = arith.constant 0 : index
    %c0_8 = arith.constant 0 : index
    %16 = vector.load %arg4[%c0_7, %c0_8] : memref<8x128xf32, #tpu.memory_space<vmem>>, vector<8x128xf32>
    tpu.vector_store %arg4[%c0_7, %c0_8], %15 {strides = array<i32>} : memref<8x128xf32, #tpu.memory_space<vmem>>, vector<8x128xf32>,
    return
  }
  func.func @transform_0(%arg0: i32) -> (i32, i32) {
    %c0_i32 = arith.constant 0 : i32
    %c0_i32_0 = arith.constant 0 : i32
    return %arg0, %c0_i32 : i32, i32
  }
  func.func @transform_1(%arg0: i32) -> (i32, i32) {
    %c0_i32 = arith.constant 0 : i32
    %c0_i32_0 = arith.constant 0 : i32
    %c0_i32_1 = arith.constant 0 : i32
    return %c0_i32, %c0_i32_0 : i32, i32
  }
  func.func @transform_2(%arg0: i32) -> (i32, i32) {
    %c0_i32 = arith.constant 0 : i32
    %c0_i32_0 = arith.constant 0 : i32
    %c0_i32_1 = arith.constant 0 : i32
    return %c0_i32, %c0_i32_0 : i32, i32
  }
  func.func @transform_3(%arg0: i32) -> (i32, i32) {
    %c0_i32 = arith.constant 0 : i32
    %c0_i32_0 = arith.constant 0 : i32
    return %arg0, %c0_i32 : i32, i32
  }
}

</mosaic_0001>

<bundles_post_ra>
// kernel: mynet_forward.1
= control target key start
LH: loop header
LB: loop body
LE: loop exit
PB: predicated region body
PF: predicated region fallthrough
CT: control target
= control target key end

     0   :  { %s703_s0 = inlined_call_operand.vmem [shape: bf16[8,512], index: 0, kind: input, shape index: {}]   ;;  %s704_s1 = inlined_call_operand.vmem [shape: bf16[512,128], index: 1, kind: input, shape index: {}]   ;;  %s705_s2 = inlined_call_operand.vmem [shape: f32[1,128], index: 2, kind: input, shape index: {}]   ;;  %s706_s3 = inlined_call_operand.hbm [shape: f32[8,128], index: 3, kind: output, shape index: {}]  }
   0x1   :  { %v517_v0 = vld [vmem:[%s704_s1 + $0x38] sm:$0xff]  ;;  %v516_v4 = vld [vmem:[%s704_s1 + $0x30] sm:$0xff]  ;;  %v515_v8 = vld [vmem:[%s704_s1 + $0x28] sm:$0xff] }
   0x2   :  { %v525_v1 = vld [vmem:[%s704_s1 + $0x78] sm:$0xff]  ;;  %291 = vmatpush.bf16.msra.mxu0 %v517_v0  ;;  %v524_v5 = vld [vmem:[%s704_s1 + $0x70] sm:$0xff]  ;;  %v523_v9 = vld [vmem:[%s704_s1 + $0x68] sm:$0xff] }
   0x3   :  { %v533_v2 = vld [vmem:[%s704_s1 + $0xb8] sm:$0xff]  ;;  %304 = vmatpush.bf16.msra.mxu1 %v525_v1  ;;  %v532_v6 = vld [vmem:[%s704_s1 + $0xb0] sm:$0xff]  ;;  %v531_v10 = vld [vmem:[%s704_s1 + $0xa8] sm:$0xff] }
   0x4   :  { %v541_v3 = vld [vmem:[%s704_s1 + $0xf8] sm:$0xff]  ;;  %317 = vmatpush.bf16.msra.mxu2 %v533_v2  ;;  %v540_v7 = vld [vmem:[%s704_s1 + $0xf0] sm:$0xff]  ;;  %v539_v11 = vld [vmem:[%s704_s1 + $0xe8] sm:$0xff] }
   0x5   :  { %330 = vmatpush.bf16.msra.mxu3 %v541_v3  ;;  %v514_v12 = vld [vmem:[%s704_s1 + $0x20] sm:$0xff] }
   0x6   :  { %292 = vmatpush.bf16.msra.mxu0 %v516_v4  ;;  %v522_v13 = vld [vmem:[%s704_s1 + $0x60] sm:$0xff] }
   0x7   :  { %305 = vmatpush.bf16.msra.mxu1 %v524_v5  ;;  %v530_v14 = vld [vmem:[%s704_s1 + $0xa0] sm:$0xff] }
   0x8   :  { %318 = vmatpush.bf16.msra.mxu2 %v532_v6  ;;  %v538_v15 = vld [vmem:[%s704_s1 + $0xe0] sm:$0xff] }
   0x9   :  { %331 = vmatpush.bf16.msra.mxu3 %v540_v7 }
   0xa   :  { %293 = vmatpush.bf16.msra.mxu0 %v515_v8 }
   0xb   :  { %306 = vmatpush.bf16.msra.mxu1 %v523_v9 }
   0xc   :  { %319 = vmatpush.bf16.msra.mxu2 %v531_v10 }
   0xd   :  { %332 = vmatpush.bf16.msra.mxu3 %v539_v11 }
   0xe   :  { %8 = vsyncpa [#allocation3], 0  ;;  %294 = vmatpush.bf16.msra.mxu0 %v514_v12  ;;  %v513_v16 = vld [vmem:[%s704_s1 + $0x18] sm:$0xff]  ;;  %v512_v20 = vld [vmem:[%s704_s1 + $0x10] sm:$0xff]  ;;  %s373_s29 = sshll.u32 %s706_s3, 4  ;;  %s374_s29 = int_to_ptr.hbm [resolvable:$true] %s373_s29 }
   0xf   :  { %307 = vmatpush.bf16.msra.mxu1 %v522_v13  ;;  %v521_v17 = vld [vmem:[%s704_s1 + $0x58] sm:$0xff]  ;;  %v520_v21 = vld [vmem:[%s704_s1 + $0x50] sm:$0xff]  ;;  %v511_v24 = vld [vmem:[%s704_s1 + $0x8] sm:$0xff] }
  0x10   :  { %320 = vmatpush.bf16.msra.mxu2 %v530_v14  ;;  %v529_v18 = vld [vmem:[%s704_s1 + $0x98] sm:$0xff]  ;;  %v528_v22 = vld [vmem:[%s704_s1 + $0x90] sm:$0xff]  ;;  %v519_v25 = vld [vmem:[%s704_s1 + $0x48] sm:$0xff] }
  0x11   :  { %333 = vmatpush.bf16.msra.mxu3 %v538_v15  ;;  %v537_v19 = vld [vmem:[%s704_s1 + $0xd8] sm:$0xff]  ;;  %v536_v23 = vld [vmem:[%s704_s1 + $0xd0] sm:$0xff]  ;;  %v15_v26 = vld [vmem:[%s703_s0] sm:$0xff] }
  0x12   :  { %295 = vmatpush.bf16.msra.mxu0 %v513_v16  ;;  %v527_v27 = vld [vmem:[%s704_s1 + $0x88] sm:$0xff]  ;;  %v87_v30 = vunpack.c.l.b16 %v15_v26  ;;  %v88_v31 = vunpack.c.h.b16 %v15_v26  ;;  %v510_v32 = vld [vmem:[%s704_s1] sm:$0xff] }
  0x13   :  { %308 = vmatpush.bf16.msra.mxu1 %v521_v17  ;;  %v535_v28 = vld [vmem:[%s704_s1 + $0xc8] sm:$0xff]  ;;  %v518_v33 = vld [vmem:[%s704_s1 + $0x40] sm:$0xff] }
  0x14   :  { %321 = vmatpush.bf16.msra.mxu2 %v529_v18  ;;  %v16_v29 = vld [vmem:[%s703_s0 + $0x8] sm:$0xff]  ;;  %v526_v36 = vld [vmem:[%s704_s1 + $0x80] sm:$0xff]  ;;  %v91_v38 = vpack.c.b16 %v87_v30, %v87_v30  ;;  %v92_v39 = vpack.c.b16 %v88_v31, %v88_v31 }
  0x15   :  { %334 = vmatpush.bf16.msra.mxu3 %v537_v19  ;;  %v89_v34 = vunpack.c.l.b16 %v16_v29  ;;  %v90_v35 = vunpack.c.h.b16 %v16_v29  ;;  %v534_v37 = vld [vmem:[%s704_s1 + $0xc0] sm:$0xff]  ;;  %s574_s1 = smov [#allocation2]  }
  0x16   :  { %296 = vmatpush.bf16.msra.mxu0 %v512_v20  ;;  %v543_v42 = vld [vmem:[%s705_s2] ss:$0 sm:$0xff]  ;;  %s371_s2 = sshll.u32 %s574_s1, 4  ;;  %s372_s2 = int_to_ptr.vmem [resolvable:$true] %s371_s2 }
  0x17   :  { %309 = vmatpush.bf16.msra.mxu1 %v520_v21  ;;  %v93_v40 = vpack.c.b16 %v89_v34, %v89_v34  ;;  %v94_v41 = vpack.c.b16 %v90_v35, %v90_v35 }
  0x18   :  { %322 = vmatpush.bf16.msra.mxu2 %v528_v22 }
  0x19   :  { %335 = vmatpush.bf16.msra.mxu3 %v536_v23 }
  0x1a   :  { %297 = vmatpush.bf16.msra.mxu0 %v511_v24 }
  0x1b   :  { %310 = vmatpush.bf16.msra.mxu1 %v519_v25 }
  0x1c   :  { %323 = vmatpush.bf16.msra.mxu2 %v527_v27 }
  0x1d   :  { %336 = vmatpush.bf16.msra.mxu3 %v535_v28 }
  0x1e   :  { %298 = vmatpush.bf16.msra.mxu0 %v510_v32 }
  0x1f   :  { %311 = vmatpush.bf16.msra.mxu1 %v518_v33 }
  0x20   :  { %324 = vmatpush.bf16.msra.mxu2 %v526_v36 }
  0x21   :  { %337 = vmatpush.bf16.msra.mxu3 %v534_v37  ;;  %299 = vmatmul.bf16.vlgmr.msra.gmra.mxu0 %v91_v38 }
  0x22   :  { %312 = vmatmul.bf16.vlgmr.msra.gmra.mxu1 %v92_v39 }
  0x23   :  { %325 = vmatmul.bf16.vlgmr.msra.gmra.mxu2 %v93_v40 }
  0x24   :  { %338 = vmatmul.bf16.vlgmr.msra.gmra.mxu3 %v94_v41 }
  0x9e   :  { %v300_v43 = vpop.f32.mrf.mxu0 }
  0x9f   :  { %v313_v44 = vpop.f32.mrf.mxu1  ;;  %v301_v45 = vadd.f32 %v543_v42, %v300_v43 }
  0xa1   :  { %v314_v46 = vadd.f32 %v313_v44, %v301_v45 }
  0xa6   :  { %v326_v47 = vpop.f32.mrf.mxu2  ;;  %v302_v50 = vpop.f32.mrf.mxu0 }
  0xa7   :  { %v339_v48 = vpop.f32.mrf.mxu3  ;;  %v327_v49 = vadd.f32 %v326_v47, %v314_v46  ;;  %v315_v51 = vpop.f32.mrf.mxu1 }
  0xa9   :  { %v340_v52 = vadd.f32 %v339_v48, %v327_v49 }
  0xab   :  { %343 = vmax.xlane.f32.xlu0 %v340_v52 }
  0xae   :  { %v328_v53 = vpop.f32.mrf.mxu2 }
  0xaf   :  { %v341_v54 = vpop.f32.mrf.mxu3 }
 0x11e   :  { %v344_v55 = vpop.xlane.xlu0 %343 }
 0x11f   :  { %v345_v56 = vsub.f32 %v340_v52, %v344_v55 }
 0x121   :  { %v346_v57 = vmul.f32 1.442695, %v345_v56 }
 0x123   :  { %544 = vpow2.f32 %v346_v57 }
 0x129   :  { %v545_v58 = vpop.eup %544 }
 0x12a   :  { %348 = vadd.xlane.f32.xlu0 %v545_v58 }
 0x19d   :  { %v349_v59 = vpop.xlane.xlu0 %348 }
 0x19e   :  { %546 = vrcp.f32 %v349_v59  ;;  %v361_v63 = vand.u32 2147483648, %v349_v59  ;;  %v359_v1 = vand.u32 2147483647, %v349_v59  ;;  %vm355_vm1 = vweird.f32 %v349_v59 }
 0x1a0   :  { %v362_v3 = vor.u32 1.1754944e-38, %v361_v63  ;;  %vm360_vm3 = vcmp.eq.f32.partialorder %v359_v1, 8.507059e+37 }
 0x1a4   :  { %v547_v60 = vpop.eup %546 }
 0x1a5   :  { %v351_v61 = vmul.f32 %v547_v60, %v349_v59  ;;  %vm356_vm0 = vweird.f32 %v547_v60 }
 0x1a6   :  { %vm357_vm2 = vmor %vm355_vm1, %vm356_vm0 }
 0x1a7   :  { %v352_v62 = vsub.f32 1.0, %v351_v61 }
 0x1a9   :  { %v353_v0 = vmul.f32 %v547_v60, %v352_v62 }
 0x1ab   :  { %v354_v2 = vadd.f32 %v547_v60, %v353_v0 }
 0x1ad   :  { %v358_v4 = vsel %vm357_vm2, %v547_v60, %v354_v2 }
 0x1ae   :  { %v363_v5 = vsel %vm360_vm3, %v362_v3, %v358_v4 }
 0x1af   :  { %v364_v6 = vmul.f32 %v545_v58, %v363_v5 }
 0x1b1   :  { %365 = vst [vmem:[#allocation2] sm:$0xff] %v364_v6 }
 0x1b2   :  { %376 = dma.vmem_to_hbm [thread:$0]  %s372_s2, 128, %s374_s29, [#allocation3]  }
 0x1b3   :  { %572 = dma.done.wait [#allocation3], 128  }
 0x1b4   :  { %573 = vsyncadd [#allocation3], 4294967168 }
 0x1b5   :  { %381 = vsyncpa [#allocation3], 1 }

</bundles_post_ra>
